<compile_context>
chip_gen: v5e
topology: v5e:2x2
jax: 0.10.0
libtpu: 0.0.40
codegen_flags: <defaults>
</compile_context>

<pallas_src>
import functools

import jax
import jax.numpy as jnp
from jax.experimental import pallas as pl
from jax.experimental.pallas import tpu as pltpu


def _round_up(n: int, m: int) -> int:
    return ((n + m - 1) // m) * m


def _round_down(n: int, m: int) -> int:
    return (n // m) * m


# VMEM budget used both to size the batch tile and as the scoped limit.
# Safe on v5e/v6e (128 MiB physical) and v7x (64 MiB physical, 32 MiB default).
_VMEM_BUDGET = 48 * 1024 * 1024
_VMEM_HEADROOM = 2 * 1024 * 1024  # internal scratch / semaphores / slack


def _value_head_kernel(x_ref, w_ref, b_ref, o_ref, *, use_mxu: bool):
    # Accumulation is always f32, regardless of the (possibly bf16) input dtype.
    x = x_ref[...].astype(jnp.float32)          # [TB, D]
    b = b_ref[...].astype(jnp.float32)          # [1, O]
    if use_mxu:
        w = w_ref[...].astype(jnp.float32)      # [D, O]  (pre-transposed in wrapper)
        acc = jnp.dot(x, w, preferred_element_type=jnp.float32)   # [TB, O]
    else:
        w = w_ref[...].astype(jnp.float32)      # [1, D]
        acc = jnp.sum(x * w, axis=-1, keepdims=True)               # [TB, 1]
    o_ref[...] = (acc + b).astype(o_ref.dtype)


def value_head_forward(x, weight, bias):
    """x: [B, D] (f32 or bf16); weight: [O, D]; bias: [O] -> [B, O] (x.dtype).

    Bandwidth-bound: the x stream dominates. Feed bf16 activations to halve HBM
    traffic; accumulation stays f32 inside the kernel either way.
    """
    B, D = x.shape
    O, D_w = weight.shape
    assert D_w == D, "weight must be [output_dim, input_dim]"

    x_isz = jnp.dtype(x.dtype).itemsize
    w_isz = jnp.dtype(weight.dtype).itemsize
    b_isz = jnp.dtype(bias.dtype).itemsize
    out_dtype = x.dtype
    o_isz = jnp.dtype(out_dtype).itemsize

    # Sublane granularity: f32 -> 8, bf16 -> 16 (sub-32-bit packs along sublanes).
    sublane = 8 * (4 // x_isz)

    # --- batch tile: the largest tile that fits the VMEM budget ---------------
    # resident operands (W + bias; assume double-buffered to be conservative)
    resident = 2 * (O * D * w_isz + O * b_isz)
    # per-row cost of the streamed operands: double-buffered x tile + out tile
    per_row = 2 * D * x_isz + 2 * O * o_isz
    tb_cap = max(sublane,
                 _round_down((_VMEM_BUDGET - _VMEM_HEADROOM - resident) // per_row,
                             sublane))
    tb = min(tb_cap, _round_up(B, sublane))
    # v7x megacore: guarantee >= 2 grid steps when the batch allows it, so the
    # "parallel" axis actually shards across both TensorCores.
    if tb >= B and B > sublane:
        tb = _round_up((B + 1) // 2, sublane)

    grid = (pl.cdiv(B, tb),)   # ragged last block is masked by Pallas

    bias2d = bias.reshape(1, O)
    use_mxu = O > 1
    if use_mxu:
        # One-time XLA transpose outside the kernel -> native [TB,D]x[D,O] matmul,
        # no per-grid-step relayout of W inside the kernel.
        w_in = weight.T                                   # [D, O]
        w_spec = pl.BlockSpec((D, O), lambda i: (0, 0))
    else:
        w_in = weight                                     # [1, D]
        w_spec = pl.BlockSpec((O, D), lambda i: (0, 0))

    kernel = functools.partial(_value_head_kernel, use_mxu=use_mxu)

    return pl.pallas_call(
        kernel,
        out_shape=jax.ShapeDtypeStruct((B, O), out_dtype),
        grid_spec=pltpu.PrefetchScalarGridSpec(
            num_scalar_prefetch=0,
            grid=grid,
            in_specs=[
                # x: streamed tile-by-tile over the batch (double-buffered DMA).
                pl.BlockSpec((tb, D), lambda i: (i, 0)),
                # W, bias: constant block index -> fetched once, resident in VMEM.
                w_spec,
                pl.BlockSpec((1, O), lambda i: (0, 0)),
            ],
            out_specs=pl.BlockSpec((tb, O), lambda i: (i, 0)),
        ),
        compiler_params=pltpu.CompilerParams(
            dimension_semantics=("parallel",),
            vmem_limit_bytes=_VMEM_BUDGET,
        ),
        cost_estimate=pl.CostEstimate(
            flops=2 * B * D * O,
            transcendentals=0,
            bytes_accessed=(B * D * x_isz + O * D * w_isz
                            + O * b_isz + B * O * o_isz),
        ),
    )(x, w_in, bias2d)


def init_value_head_params(key, input_dim, output_dim=1):
    # Matches ValueHead._initialize_variables(): uniform_(-0.003, 0.003)
    kw, kb = jax.random.split(key)
    weight = jax.random.uniform(kw, (output_dim, input_dim),
                                minval=-0.003, maxval=0.003, dtype=jnp.float32)
    bias = jax.random.uniform(kb, (output_dim,),
                              minval=-0.003, maxval=0.003, dtype=jnp.float32)
    return weight, bias


# TODO(synk): noise_type='factorized'/'independent' (NoisyLinear variants) are not
# implemented; only the noise_type='none' (plain Linear) forward path is covered.

if __name__ == "__main__":
    key = jax.random.PRNGKey(0)
    k_x, k_p, k_x2, k_p2, k_x3, k_p3 = jax.random.split(key, 6)

    # Case 1: canonical value head (output_dim=1), f32 -> VPU reduce path.
    batch, input_dim, output_dim = 2, 32, 1
    x = jax.random.normal(k_x, (batch, input_dim), dtype=jnp.float32)
    weight, bias = init_value_head_params(k_p, input_dim, output_dim)
    out = jax.block_until_ready(value_head_forward(x, weight, bias))
    ref = x @ weight.T + bias[None, :]
    assert out.shape == (batch, output_dim)
    assert jnp.allclose(out, ref, atol=1e-5, rtol=1e-5)

    # Case 2: multi-output head, ragged batch (B=19) -> MXU path with
    # pre-transposed W, masked last block, >=2 grid steps (no wrapper-side pad).
    batch2, input_dim2, output_dim2 = 19, 32, 4
    x2 = jax.random.normal(k_x2, (batch2, input_dim2), dtype=jnp.float32)
    weight2, bias2 = init_value_head_params(k_p2, input_dim2, output_dim2)
    out2 = jax.block_until_ready(value_head_forward(x2, weight2, bias2))
    ref2 = x2 @ weight2.T + bias2[None, :]
    assert out2.shape == (batch2, output_dim2)
    assert jnp.allclose(out2, ref2, atol=1e-5, rtol=1e-5)

    # Case 3: bf16 activations (halved HBM traffic), f32 accumulation inside.
    batch3, input_dim3, output_dim3 = 19, 32, 1
    x3 = jax.random.normal(k_x3, (batch3, input_dim3), dtype=jnp.float32
                           ).astype(jnp.bfloat16)
    weight3, bias3 = init_value_head_params(k_p3, input_dim3, output_dim3)
    out3 = jax.block_until_ready(value_head_forward(x3, weight3, bias3))
    ref3 = x3.astype(jnp.float32) @ weight3.T + bias3[None, :]
    assert out3.shape == (batch3, output_dim3)
    assert out3.dtype == jnp.bfloat16
    assert jnp.allclose(out3.astype(jnp.float32), ref3, atol=2e-3, rtol=2e-2)

    print("KERNEL_OK")
</pallas_src>

<mosaic_0001>
module attributes {stable_mosaic.version = 11 : i64} {
  func.func @_value_head_kernel(%arg0: i32, %arg1: memref<8x32xf32, #tpu.memory_space<vmem>>, %arg2: memref<1x32xf32, #tpu.memory_space<vmem>>, %arg3: memref<1x1xf32, #tpu.memory_space<vmem>>, %arg4: memref<8x1xf32, #tpu.memory_space<vmem>>) attributes {dimension_semantics = [#tpu.dimension_semantics<parallel>], iteration_bounds = array<i64: 1>, scalar_prefetch = 0 : i64, scratch_operands = 0 : i64, tpu.core_type = #tpu.core_type<tc>, window_params = [{transform_indices = @transform_0, window_bounds = array<i64: 8, 32>}, {pipeline_mode = #tpu.pipeline_mode<synchronous>, transform_indices = @transform_1, window_bounds = array<i64: 1, 32>}, {pipeline_mode = #tpu.pipeline_mode<synchronous>, transform_indices = @transform_2, window_bounds = array<i64: 1, 1>}, {transform_indices = @transform_3, window_bounds = array<i64: 8, 1>}]} {
    %c0 = arith.constant 0 : index
    %c0_0 = arith.constant 0 : index
    %0 = vector.load %arg1[%c0, %c0_0] : memref<8x32xf32, #tpu.memory_space<vmem>>, vector<8x32xf32>
    %c0_1 = arith.constant 0 : index
    %c0_2 = arith.constant 0 : index
    %1 = vector.load %arg3[%c0_1, %c0_2] : memref<1x1xf32, #tpu.memory_space<vmem>>, vector<1x1xf32>
    %c0_3 = arith.constant 0 : index
    %c0_4 = arith.constant 0 : index
    %2 = vector.load %arg2[%c0_3, %c0_4] : memref<1x32xf32, #tpu.memory_space<vmem>>, vector<1x32xf32>
    %3 = vector.broadcast %2 : vector<1x32xf32> to vector<8x32xf32>
    %4 = arith.mulf %0, %3 : vector<8x32xf32>
    %cst = arith.constant dense<0.000000e+00> : vector<8xf32>
    %5 = vector.multi_reduction <add>, %4, %cst [1] : vector<8x32xf32> to vector<8xf32>
    %6 = vector.shape_cast %5 : vector<8xf32> to vector<8x1xf32>
    %7 = vector.broadcast %1 : vector<1x1xf32> to vector<8x1xf32>
    %8 = arith.addf %6, %7 : vector<8x1xf32>
    %c0_5 = arith.constant 0 : index
    %c0_6 = arith.constant 0 : index
    %9 = vector.load %arg4[%c0_5, %c0_6] : memref<8x1xf32, #tpu.memory_space<vmem>>, vector<8x1xf32>
    tpu.vector_store %arg4[%c0_5, %c0_6], %8 {strides = array<i32>} : memref<8x1xf32, #tpu.memory_space<vmem>>, vector<8x1xf32>,
    return
  }
  func.func @transform_0(%arg0: i32) -> (i32, i32) {
    %c0_i32 = arith.constant 0 : i32
    %c0_i32_0 = arith.constant 0 : i32
    return %arg0, %c0_i32 : i32, i32
  }
  func.func @transform_1(%arg0: i32) -> (i32, i32) {
    %c0_i32 = arith.constant 0 : i32
    %c0_i32_0 = arith.constant 0 : i32
    %c0_i32_1 = arith.constant 0 : i32
    return %c0_i32, %c0_i32_0 : i32, i32
  }
  func.func @transform_2(%arg0: i32) -> (i32, i32) {
    %c0_i32 = arith.constant 0 : i32
    %c0_i32_0 = arith.constant 0 : i32
    %c0_i32_1 = arith.constant 0 : i32
    return %c0_i32, %c0_i32_0 : i32, i32
  }
  func.func @transform_3(%arg0: i32) -> (i32, i32) {
    %c0_i32 = arith.constant 0 : i32
    %c0_i32_0 = arith.constant 0 : i32
    return %arg0, %c0_i32 : i32, i32
  }
}

</mosaic_0001>

<bundles_post_ra>
// kernel: tpu_custom_call.1
= control target key start
LH: loop header
LB: loop body
LE: loop exit
PB: predicated region body
PF: predicated region fallthrough
CT: control target
= control target key end

     0   :  { %s151_s0 = inlined_call_operand.vmem [shape: f32[2,32], index: 0, kind: input, shape index: {}]   ;;  %s152_s1 = inlined_call_operand.hbm [shape: f32[1,32], index: 1, kind: input, shape index: {}]   ;;  %s153_s2 = inlined_call_operand.<no memory space> [shape: f32[1,1], index: 2, kind: input, shape index: {}]   ;;  %s154_s3 = inlined_call_operand.vmem [shape: f32[2,1], index: 3, kind: output, shape index: {}]  }
   0x1   :  { %v8_v0 = vstv %s153_s2 }
   0x2   :  { %9 = vst [vmem:[#allocation2] sm:$0x1] %v8_v0 }
   0x3   :  { %10 = vsyncpa [#allocation4], 0  ;;  %s18_s16 = sshll.u32 %s152_s1, 4  ;;  %s118_s17 = smov [#allocation3]   ;;  %s19_s16 = int_to_ptr.hbm [resolvable:$true] %s18_s16 }
   0x4   :  { %s20_s18 = sshll.u32 %s118_s17, 4  ;;  %s21_s18 = int_to_ptr.vmem [resolvable:$true] %s20_s18 }
   0x5   :  { %23 = dma.hbm_to_vmem [thread:$0]  %s19_s16, 16, %s21_s18, [#allocation4]  }
   0x6   :  { %116 = dma.done.wait [#allocation4], 16  }
   0x7   :  { %117 = vsyncadd [#allocation4], 4294967280  ;;  %v30_v1 = vld [vmem:[%s151_s0] sm:$0xff]  ;;  %vm37_vm0 = vcmask 261120   ;;  %vm45_vm1 = vcmask 7168  }
   0x8   :  { %v90_v2 = vld [vmem:[#allocation3] ss:$0 sm:$0xff] }
   0x9   :  { %v36_v3 = vmul.f32 %v90_v2, %v30_v1  ;;  %v91_v5 = vld [vmem:[#allocation2] ss:$0 sm:$0xff] }
   0xb   :  { %v38_v4 = vsel %vm37_vm0, %v36_v3, 0.0 }
   0xc   :  { %39 = vadd.xlane.f32.xlu0 %v38_v4 }
  0x7f   :  { %v40_v6 = vpop.xlane.xlu0 %39 }
  0x80   :  { %v44_v7 = vadd.f32 %v91_v5, %v40_v6 }
  0x82   :  { %46 = vst.msk [vmem:[#allocation5] sm:$0xff] %vm45_vm1, %v44_v7 }
  0x89   :  { %v65_v8 = vld [vmem:[#allocation5] sm:$0x3] }
  0x8a   :  { %66 = vst [vmem:[%s154_s3] sm:$0x3] %v65_v8 }
  0x8b   :  { %84 = vsyncpa [#allocation4], 1 }

</bundles_post_ra>
